<compile_context>
chip_gen: v6e
topology: v6e:2x2x1
jax: 0.10.0
libtpu: 0.0.40
codegen_flags: <defaults>
</compile_context>

<pallas_src>
import jax
import jax.numpy as jnp
from jax import lax
from jax.experimental import pallas as pl
from jax.experimental.pallas import tpu as pltpu


def _linear_kernel(x_ref, w_ref, o_ref):
    """One (tm, tn) output tile.

    x_ref: (tm, K) bf16, w_ref: (tn, K) bf16 (native nn.Linear layout).
    Contract K against K (x @ w.T) in a single whole-K MXU pass, f32 accumulate.
    """
    o_ref[...] = lax.dot_general(
        x_ref[...],
        w_ref[...],
        dimension_numbers=(((1,), (1,)), ((), ())),
        preferred_element_type=jnp.float32,
    ).astype(o_ref.dtype)


def _round_up(x, m):
    return ((x + m - 1) // m) * m


def _select_tm(M):
    # Big M (cache-build / large test batch): MXU-256-aligned tiles; tm=512
    # halves the weight refetch traffic vs 256 and is still ~1 MiB per buffer.
    if M >= 512:
        return 512
    if M >= 256:
        return 256
    if M >= 128:
        return 128
    # Small-batch inference: one partial block, rounded for bf16 sublane packing.
    return _round_up(max(M, 16), 16)


def _select_tn(N):
    # Keep tn a multiple of 128 (lane-dense unmasked stores) and ensure >= 2
    # programs along N when N >= 256 so both v7x TensorCores get work.
    if N >= 1024:
        return 512
    if N >= 512:
        return 256
    if N >= 256:
        return 128
    return _round_up(max(N, 128), 128)


def tip_adapter_forward(image_features, weight, *, out_dtype=jnp.float32):
    """Forward of Tip_Adapter.linear1: image_features @ weight.T.

    image_features: (M, K) bfloat16
    weight:         (N, K) bfloat16  (nn.Linear weight layout, N = cls_num*shots)
    returns:        (M, N) out_dtype
    """
    M, K = image_features.shape
    N, K2 = weight.shape
    assert K == K2, (K, K2)

    tm = _select_tm(M)
    tn = _select_tn(N)
    grid_m = pl.cdiv(M, tm)
    grid_n = pl.cdiv(N, tn)

    x_item = jnp.dtype(image_features.dtype).itemsize
    w_item = jnp.dtype(weight.dtype).itemsize
    out_item = jnp.dtype(out_dtype).itemsize

    # Double-buffered working set (x tile + w tile + out tile), plus headroom.
    # Cap at 64 MiB so the budget is valid per-TensorCore on v7x as well.
    working = 2 * (tm * K * x_item + tn * K * w_item + tm * tn * out_item)
    vmem_limit = int(min(max(2 * working, 16 * 1024 * 1024), 64 * 1024 * 1024))

    # Weight refetch: with the N axis innermost, the weight block index changes
    # every step when grid_n > 1 (re-streamed once per x row-block); when
    # grid_n == 1 the index never changes and Pallas keeps it VMEM-resident.
    w_reads = grid_m if grid_n > 1 else 1
    cost = pl.CostEstimate(
        flops=2 * M * N * K,
        bytes_accessed=M * K * x_item + w_reads * N * K * w_item + M * N * out_item,
        transcendentals=0,
    )

    w_spec_kwargs = {}
    if grid_m <= 2 and grid_n >= 4:
        # Small-batch, weight-streaming regime: only one short matmul of compute
        # per step, so deepen the weight pipeline to hide its DMA latency.
        w_spec_kwargs["pipeline_mode"] = pl.Buffered(3)

    out = pl.pallas_call(
        _linear_kernel,
        out_shape=jax.ShapeDtypeStruct((M, N), out_dtype),
        grid_spec=pltpu.PrefetchScalarGridSpec(
            num_scalar_prefetch=0,
            grid=(grid_m, grid_n),
            in_specs=[
                pl.BlockSpec((tm, K), lambda i, j: (i, 0)),
                pl.BlockSpec((tn, K), lambda i, j: (j, 0), **w_spec_kwargs),
            ],
            out_specs=pl.BlockSpec((tm, tn), lambda i, j: (i, j)),
        ),
        compiler_params=pltpu.CompilerParams(
            dimension_semantics=("parallel", "parallel"),
            vmem_limit_bytes=vmem_limit,
        ),
        cost_estimate=cost,
    )(image_features, weight)

    return out


if __name__ == "__main__":
    # Module-implied shapes: feature dim fixed at 1024 by nn.Linear(1024, ...).
    # Small synthetic cache: cls_num=16, shots=8 -> 128 output columns.
    batch = 8
    feat_dim = 1024
    cls_num, shots = 16, 8
    out_dim = cls_num * shots

    key = jax.random.PRNGKey(0)
    k_x, k_w = jax.random.split(key)

    # Deterministic synthetic parameters (stand-in for torch.load(train_features_path).t()).
    image_features = jax.random.normal(k_x, (batch, feat_dim), dtype=jnp.float32)
    # linear1.weight has shape (cls_num*shots, 1024); forward uses its transpose.
    weight = jax.random.normal(k_w, (out_dim, feat_dim), dtype=jnp.float32) * 0.02

    x_bf16 = image_features.astype(jnp.bfloat16)
    w_bf16 = weight.astype(jnp.bfloat16)

    out = tip_adapter_forward(x_bf16, w_bf16)
    out = jax.block_until_ready(out)
    assert out.shape == (batch, out_dim), out.shape

    # Exactness of the kernel itself: compare against a matmul of the same
    # bf16-rounded inputs.
    ref_exact = jnp.dot(x_bf16.astype(jnp.float32), w_bf16.astype(jnp.float32).T)
    err_exact = float(jnp.max(jnp.abs(out - ref_exact)))
    assert err_exact < 5e-2, f"err_exact={err_exact}"

    # bf16-vs-fp32 drift check against the unrounded inputs (loose bound: the
    # input rounding error alone is ~1e-2 max over K=1024 at these scales).
    ref_fp32 = jnp.dot(image_features, weight.T)
    err_fp32 = float(jnp.max(jnp.abs(out - ref_fp32)))
    assert err_fp32 < 2.5e-1, f"err_fp32={err_fp32}"

    print("KERNEL_OK")
</pallas_src>

<mosaic_0001>
module attributes {stable_mosaic.version = 11 : i64} {
  func.func @_linear_kernel(%arg0: i32, %arg1: i32, %arg2: memref<16x1024xbf16, #tpu.memory_space<vmem>>, %arg3: memref<128x1024xbf16, #tpu.memory_space<vmem>>, %arg4: memref<16x128xf32, #tpu.memory_space<vmem>>) attributes {dimension_semantics = [#tpu.dimension_semantics<parallel>, #tpu.dimension_semantics<parallel>], iteration_bounds = array<i64: 1, 1>, scalar_prefetch = 0 : i64, scratch_operands = 0 : i64, tpu.core_type = #tpu.core_type<tc>, window_params = [{transform_indices = @transform_0, window_bounds = array<i64: 16, 1024>}, {transform_indices = @transform_1, window_bounds = array<i64: 128, 1024>}, {transform_indices = @transform_2, window_bounds = array<i64: 16, 128>}]} {
    %c0 = arith.constant 0 : index
    %c0_0 = arith.constant 0 : index
    %0 = vector.load %arg2[%c0, %c0_0] : memref<16x1024xbf16, #tpu.memory_space<vmem>>, vector<16x1024xbf16>
    %c0_1 = arith.constant 0 : index
    %c0_2 = arith.constant 0 : index
    %1 = vector.load %arg3[%c0_1, %c0_2] : memref<128x1024xbf16, #tpu.memory_space<vmem>>, vector<128x1024xbf16>
    %cst = arith.constant dense<0.000000e+00> : vector<16x128xf32>
    %2 = tpu.matmul %0, %1, %cst {dimension_numbers = #tpu.dot_dimension_numbers<[1], [1], [0], [0], [0, 0, 1, 0], [], []>} : vector<16x1024xbf16>, vector<128x1024xbf16>, vector<16x128xf32> -> vector<16x128xf32>
    %c0_3 = arith.constant 0 : index
    %c0_4 = arith.constant 0 : index
    %3 = vector.load %arg4[%c0_3, %c0_4] : memref<16x128xf32, #tpu.memory_space<vmem>>, vector<16x128xf32>
    tpu.vector_store %arg4[%c0_3, %c0_4], %2 {strides = array<i32>} : memref<16x128xf32, #tpu.memory_space<vmem>>, vector<16x128xf32>,
    return
  }
  func.func @transform_0(%arg0: i32, %arg1: i32) -> (i32, i32) {
    %c0_i32 = arith.constant 0 : i32
    %c0_i32_0 = arith.constant 0 : i32
    return %arg0, %c0_i32 : i32, i32
  }
  func.func @transform_1(%arg0: i32, %arg1: i32) -> (i32, i32) {
    %c0_i32 = arith.constant 0 : i32
    %c0_i32_0 = arith.constant 0 : i32
    return %arg1, %c0_i32 : i32, i32
  }
  func.func @transform_2(%arg0: i32, %arg1: i32) -> (i32, i32) {
    %c0_i32 = arith.constant 0 : i32
    return %arg0, %arg1 : i32, i32
  }
}

</mosaic_0001>

<bundles_post_ra>
// kernel: tpu_custom_call.1
= control target key start
LH: loop header
LB: loop body
LE: loop exit
PB: predicated region body
PF: predicated region fallthrough
CT: control target
= control target key end

     0   :  { %7 = vsyncpa [#allocation3], 0  ;;  %s865_s0 = inlined_call_operand.hbm [shape: bf16[8,1024], index: 0, kind: input, shape index: {}]   ;;  %s866_s1 = inlined_call_operand.hbm [shape: bf16[128,1024], index: 1, kind: input, shape index: {}]   ;;  %s867_s2 = inlined_call_operand.hbm [shape: f32[8,128], index: 2, kind: output, shape index: {}]  }
   0x1   :  { %8 = vsyncpa [#allocation6], 0 }
   0x2   :  { %9 = vsyncpa [#allocation4], 0 }
   0x3   :  { %14 = vsyncadd [#allocation3], 512  ;;  %s802_s9 = smov [#allocation2]  }
   0x4   :  { %s15_s10 = sshll.u32 %s802_s9, 4  ;;  %s16_s10 = int_to_ptr.vmem [resolvable:$true] %s15_s10 }
   0x5   :  { %s744_s11 = scalar_lea.vmem %s16_s10, 512  ;;  %s748_s12 = scalar_lea.vmem %s16_s10, 1024 }
   0x6   :  { %p745_p0 = scmp.ne.s32.totalorder %s16_s10, %s744_s11  ;;  %p749_p1 = scmp.lt.s32.totalorder %s16_s10, %s16_s10 }
   0x7   :  { %p750_p2 = scmp.lt.s32.totalorder %s748_s12, %s744_s11 }
   0x9   :  { %p751_p3 = por %p750_p2, %p749_p1 }
   0xb   :  { %p752_p4 = pnand %p751_p3, %p745_p0 }
   0xd   :  { %755 = shalt.err (!%p752_p4)
}
   0xe   :  { %s803_s13 = smov 512   ;;  %s804_s14 = smov 32  }
   0xf   :  { %21 = dma.hbm_to_vmem [thread:$0]  %s865_s0, 512, %s16_s10, [#allocation3], %s803_s13, %s803_s13, %s804_s14  }
  0x10   :  { %s805_s17 = smov [#allocation5]  }
  0x11   :  { %s27_s18 = sshll.u32 %s805_s17, 4  ;;  %s28_s18 = int_to_ptr.vmem [resolvable:$true] %s27_s18 }
  0x12   :  { %s764_s19 = scalar_lea.vmem %s28_s18, 8192  ;;  %p769_p6 = scmp.lt.s32.totalorder %s28_s18, %s28_s18 }
  0x13   :  { %p765_p5 = scmp.ne.s32.totalorder %s28_s18, %s764_s19  ;;  %p770_p7 = scmp.lt.s32.totalorder %s764_s19, %s764_s19 }
  0x15   :  { %p771_p8 = por %p770_p7, %p769_p6 }
  0x17   :  { %p772_p9 = pnand %p771_p8, %p765_p5 }
  0x19   :  { %775 = shalt.err (!%p772_p9)
}
  0x1a   :  { %33 = dma.hbm_to_vmem [thread:$0]  %s866_s1, 8192, %s28_s18, [#allocation6], %s803_s13, %s803_s13, %s804_s14  }
  0x1b   :  { %796 = dma.done.wait [#allocation3], 1024  }
  0x1c   :  { %797 = vsyncadd [#allocation3], 4294966272 }
  0x1d   :  { %798 = dma.done.wait [#allocation6], 8192  }
  0x1e   :  { %799 = vsyncadd [#allocation6], 4294959104  ;;  %v105_v0 = vld [vmem:[#allocation5 + $0x1c0] sm:$0xff]  ;;  %v106_v2 = vld [vmem:[#allocation5 + $0x1c8] sm:$0xff] }
  0x1f   :  { %v109_v1 = vld [vmem:[#allocation5 + $0x1e0] sm:$0xff]  ;;  %v110_v4 = vld [vmem:[#allocation5 + $0x1e8] sm:$0xff] }
  0x20   :  { %v722_v3 = vcombine.high %v105_v0, %v109_v1  ;;  %v721_v5 = vcombine.low %v105_v0, %v109_v1  ;;  %v97_v6 = vld [vmem:[#allocation5 + $0x180] sm:$0xff]  ;;  %v724_v8 = vcombine.high %v106_v2, %v110_v4  ;;  %v723_v9 = vcombine.low %v106_v2, %v110_v4  ;;  %v98_v11 = vld [vmem:[#allocation5 + $0x188] sm:$0xff]  ;;  %v107_v4 = vld [vmem:[#allocation5 + $0x1d0] sm:$0xff] }
  0x21   :  { %v101_v7 = vld [vmem:[#allocation5 + $0x1a0] sm:$0xff]  ;;  %v102_v12 = vld [vmem:[#allocation5 + $0x1a8] sm:$0xff] }
  0x22   :  { %v714_v10 = vcombine.high %v97_v6, %v101_v7  ;;  %473 = vmatprep.subr.bf16.mxu0 %v722_v3  ;;  %v716_v13 = vcombine.high %v98_v11, %v102_v12  ;;  %514 = vmatprep.subr.bf16.mxu1 %v724_v8  ;;  %v89_v14 = vld [vmem:[#allocation5 + $0x140] sm:$0xff]  ;;  %v90_v16 = vld [vmem:[#allocation5 + $0x148] sm:$0xff]  ;;  %v713_v18 = vcombine.low %v97_v6, %v101_v7  ;;  %v108_v6 = vld [vmem:[#allocation5 + $0x1d8] sm:$0xff] }
  0x23   :  { %474 = vmatpush1.bf16.xpose.msra.mxu0 %v721_v5  ;;  %515 = vmatpush1.bf16.xpose.msra.mxu1 %v723_v9  ;;  %v93_v15 = vld [vmem:[#allocation5 + $0x160] sm:$0xff]  ;;  %v94_v17 = vld [vmem:[#allocation5 + $0x168] sm:$0xff]  ;;  %v715_v19 = vcombine.low %v98_v11, %v102_v12  ;;  %v111_v5 = vld [vmem:[#allocation5 + $0x1f0] sm:$0xff] }
  0x24   :  { %475 = vmatprep.subr.bf16.mxu0 %v714_v10  ;;  %516 = vmatprep.subr.bf16.mxu1 %v716_v13  ;;  %v706_v20 = vcombine.high %v89_v14, %v93_v15  ;;  %v708_v21 = vcombine.high %v90_v16, %v94_v17  ;;  %v830_v22 = vld [vmem:[#allocation2] sm:$0xff]  ;;  %v834_v24 = vld [vmem:[#allocation2 + $0x8] sm:$0xff]  ;;  %v705_v32 = vcombine.low %v89_v14, %v93_v15  ;;  %v112_v7 = vld [vmem:[#allocation5 + $0x1f8] sm:$0xff] }
  0x25   :  { %v832_v23 = vld [vmem:[#allocation2 + $0x20] sm:$0xff]  ;;  %v836_v25 = vld [vmem:[#allocation2 + $0x28] sm:$0xff]  ;;  %v707_v33 = vcombine.low %v90_v16, %v94_v17  ;;  %v726_v10 = vcombine.high %v107_v4, %v111_v5  ;;  %v728_v11 = vcombine.high %v108_v6, %v112_v7  ;;  %v99_v12 = vld [vmem:[#allocation5 + $0x190] sm:$0xff] }
  0x26   :  { %v658_v26 = vcombine.high %v830_v22, %v832_v23  ;;  %v660_v27 = vcombine.high %v834_v24, %v836_v25  ;;  %v81_v28 = vld [vmem:[#allocation5 + $0x100] sm:$0xff]  ;;  %v82_v30 = vld [vmem:[#allocation5 + $0x108] sm:$0xff]  ;;  %v103_v13 = vld [vmem:[#allocation5 + $0x1b0] sm:$0xff]  ;;  %v657_v15 = vcombine.low %v830_v22, %v832_v23 }
  0x27   :  { %v85_v29 = vld [vmem:[#allocation5 + $0x120] sm:$0xff]  ;;  %v86_v31 = vld [vmem:[#allocation5 + $0x128] sm:$0xff]  ;;  %v100_v14 = vld [vmem:[#allocation5 + $0x198] sm:$0xff] }
  0x28   :  { %505 = vmatprep.mubr.bf16.mxu0 %v658_v26  ;;  %546 = vmatprep.mubr.bf16.mxu1 %v660_v27  ;;  %v698_v34 = vcombine.high %v81_v28, %v85_v29  ;;  %v700_v35 = vcombine.high %v82_v30, %v86_v31  ;;  %v73_v36 = vld [vmem:[#allocation5 + $0xc0] sm:$0xff]  ;;  %v74_v38 = vld [vmem:[#allocation5 + $0xc8] sm:$0xff]  ;;  %v697_v40 = vcombine.low %v81_v28, %v85_v29  ;;  %v104_v16 = vld [vmem:[#allocation5 + $0x1b8] sm:$0xff] }
  0x29   :  { %v77_v37 = vld [vmem:[#allocation5 + $0xe0] sm:$0xff]  ;;  %v78_v39 = vld [vmem:[#allocation5 + $0xe8] sm:$0xff]  ;;  %v699_v41 = vcombine.low %v82_v30, %v86_v31  ;;  %v844_v17 = vld [vmem:[#allocation2 + $0x10] sm:$0xff]  ;;  %v727_v27 = vcombine.low %v108_v6, %v112_v7  ;;  %v718_v28 = vcombine.high %v99_v12, %v103_v13  ;;  %v720_v29 = vcombine.high %v100_v14, %v104_v16 }
  0x2a   :  { %v690_v42 = vcombine.high %v73_v36, %v77_v37  ;;  %v692_v43 = vcombine.high %v74_v38, %v78_v39  ;;  %v65_v44 = vld [vmem:[#allocation5 + $0x80] sm:$0xff]  ;;  %v66_v46 = vld [vmem:[#allocation5 + $0x88] sm:$0xff]  ;;  %v689_v48 = vcombine.low %v73_v36, %v77_v37  ;;  %v691_v49 = vcombine.low %v74_v38, %v78_v39  ;;  %v852_v26 = vld [vmem:[#allocation2 + $0x38] sm:$0xff] }
  0x2b   :  { %476 = vmatpush1.bf16.xpose.msra.mxu0 %v713_v18  ;;  %517 = vmatpush1.bf16.xpose.msra.mxu1 %v715_v19  ;;  %v69_v45 = vld [vmem:[#allocation5 + $0xa0] sm:$0xff]  ;;  %v70_v47 = vld [vmem:[#allocation5 + $0xa8] sm:$0xff]  ;;  %v846_v18 = vld [vmem:[#allocation2 + $0x30] sm:$0xff]  ;;  %v659_v19 = vcombine.low %v834_v24, %v836_v25 }
  0x2c   :  { %477 = vmatprep.subr.bf16.mxu0 %v706_v20  ;;  %518 = vmatprep.subr.bf16.mxu1 %v708_v21  ;;  %v682_v50 = vcombine.high %v65_v44, %v69_v45  ;;  %v684_v51 = vcombine.high %v66_v46, %v70_v47  ;;  %v57_v52 = vld [vmem:[#allocation5 + $0x40] sm:$0xff]  ;;  %v58_v54 = vld [vmem:[#allocation5 + $0x48] sm:$0xff]  ;;  %v681_v56 = vcombine.low %v65_v44, %v69_v45  ;;  %v850_v21 = vld [vmem:[#allocation2 + $0x18] sm:$0xff] }
  0x2d   :  { %v61_v53 = vld [vmem:[#allocation5 + $0x60] sm:$0xff]  ;;  %v62_v55 = vld [vmem:[#allocation5 + $0x68] sm:$0xff]  ;;  %v683_v57 = vcombine.low %v66_v46, %v70_v47  ;;  %v725_v20 = vcombine.low %v107_v4, %v111_v5  ;;  %v662_v30 = vcombine.high %v844_v17, %v846_v18  ;;  %v664_v22 = vcombine.high %v850_v21, %v852_v26  ;;  %v91_v23 = vld [vmem:[#allocation5 + $0x150] sm:$0xff] }
  0x2e   :  { %v674_v58 = vcombine.high %v57_v52, %v61_v53  ;;  %v676_v59 = vcombine.high %v58_v54, %v62_v55  ;;  %v49_v60 = vld [vmem:[#allocation5] sm:$0xff]  ;;  %v50_v62 = vld [vmem:[#allocation5 + $0x8] sm:$0xff]  ;;  %v673_v0 = vcombine.low %v57_v52, %v61_v53  ;;  %v675_v1 = vcombine.low %v58_v54, %v62_v55  ;;  %v95_v24 = vld [vmem:[#allocation5 + $0x170] sm:$0xff] }
  0x2f   :  { %v53_v61 = vld [vmem:[#allocation5 + $0x20] sm:$0xff]  ;;  %v54_v63 = vld [vmem:[#allocation5 + $0x28] sm:$0xff]  ;;  %v92_v25 = vld [vmem:[#allocation5 + $0x158] sm:$0xff] }
  0x30   :  { %v666_v2 = vcombine.high %v49_v60, %v53_v61  ;;  %v668_v3 = vcombine.high %v50_v62, %v54_v63  ;;  %v665_v8 = vcombine.low %v49_v60, %v53_v61  ;;  %v667_v9 = vcombine.low %v50_v62, %v54_v63  ;;  %v96_v31 = vld [vmem:[#allocation5 + $0x178] sm:$0xff]  ;;  %v83_v36 = vld [vmem:[#allocation5 + $0x110] sm:$0xff] }
  0x31   :  { %v87_v37 = vld [vmem:[#allocation5 + $0x130] sm:$0xff]  ;;  %v84_v38 = vld [vmem:[#allocation5 + $0x118] sm:$0xff] }
  0x32   :  { %v88_v39 = vld [vmem:[#allocation5 + $0x138] sm:$0xff]  ;;  %v75_v44 = vld [vmem:[#allocation5 + $0xd0] sm:$0xff] }
  0x33   :  { %478 = vmatpush1.bf16.xpose.msra.mxu0 %v705_v32  ;;  %519 = vmatpush1.bf16.xpose.msra.mxu1 %v707_v33  ;;  %v717_v32 = vcombine.low %v99_v12, %v103_v13  ;;  %v719_v33 = vcombine.low %v100_v14, %v104_v16  ;;  %v79_v45 = vld [vmem:[#allocation5 + $0xf0] sm:$0xff]  ;;  %v76_v46 = vld [vmem:[#allocation5 + $0xd8] sm:$0xff]  ;;  %v661_v14 = vcombine.low %v844_v17, %v846_v18 }
  0x34   :  { %479 = vmatprep.subr.bf16.mxu0 %v698_v34  ;;  %520 = vmatprep.subr.bf16.mxu1 %v700_v35  ;;  %v710_v34 = vcombine.high %v91_v23, %v95_v24  ;;  %v712_v35 = vcombine.high %v92_v25, %v96_v31  ;;  %v80_v47 = vld [vmem:[#allocation5 + $0xf8] sm:$0xff]  ;;  %v67_v52 = vld [vmem:[#allocation5 + $0x90] sm:$0xff] }
  0x35   :  { %v71_v53 = vld [vmem:[#allocation5 + $0xb0] sm:$0xff]  ;;  %v68_v54 = vld [vmem:[#allocation5 + $0x98] sm:$0xff] }
  0x36   :  { %v72_v55 = vld [vmem:[#allocation5 + $0xb8] sm:$0xff]  ;;  %v59_v60 = vld [vmem:[#allocation5 + $0x50] sm:$0xff] }
  0x37   :  { %v63_v61 = vld [vmem:[#allocation5 + $0x70] sm:$0xff]  ;;  %v60_v62 = vld [vmem:[#allocation5 + $0x58] sm:$0xff] }
  0x38   :  { %v64_v63 = vld [vmem:[#allocation5 + $0x78] sm:$0xff]  ;;  %v51_v4 = vld [vmem:[#allocation5 + $0x10] sm:$0xff] }
  0x39   :  { %v55_v5 = vld [vmem:[#allocation5 + $0x30] sm:$0xff]  ;;  %v52_v6 = vld [vmem:[#allocation5 + $0x18] sm:$0xff] }
  0x3a   :  { %v56_v7 = vld [vmem:[#allocation5 + $0x38] sm:$0xff]  ;;  %v669_v12 = vcombine.low %v51_v4, %v55_v5 }
  0x3b   :  { %480 = vmatpush1.bf16.xpose.msra.mxu0 %v697_v40  ;;  %521 = vmatpush1.bf16.xpose.msra.mxu1 %v699_v41  ;;  %v709_v40 = vcombine.low %v91_v23, %v95_v24  ;;  %v711_v41 = vcombine.low %v92_v25, %v96_v31  ;;  %v671_v13 = vcombine.low %v52_v6, %v56_v7 }
  0x3c   :  { %481 = vmatprep.subr.bf16.mxu0 %v690_v42  ;;  %522 = vmatprep.subr.bf16.mxu1 %v692_v43  ;;  %v702_v42 = vcombine.high %v83_v36, %v87_v37  ;;  %v704_v43 = vcombine.high %v84_v38, %v88_v39 }
  0x43   :  { %482 = vmatpush1.bf16.xpose.msra.mxu0 %v689_v48  ;;  %523 = vmatpush1.bf16.xpose.msra.mxu1 %v691_v49  ;;  %v701_v48 = vcombine.low %v83_v36, %v87_v37  ;;  %v703_v49 = vcombine.low %v84_v38, %v88_v39 }
  0x44   :  { %483 = vmatprep.subr.bf16.mxu0 %v682_v50  ;;  %524 = vmatprep.subr.bf16.mxu1 %v684_v51  ;;  %v694_v50 = vcombine.high %v75_v44, %v79_v45  ;;  %v696_v51 = vcombine.high %v76_v46, %v80_v47 }
  0x4b   :  { %484 = vmatpush1.bf16.xpose.msra.mxu0 %v681_v56  ;;  %525 = vmatpush1.bf16.xpose.msra.mxu1 %v683_v57  ;;  %v693_v56 = vcombine.low %v75_v44, %v79_v45  ;;  %v695_v57 = vcombine.low %v76_v46, %v80_v47 }
  0x4c   :  { %485 = vmatprep.subr.bf16.mxu0 %v674_v58  ;;  %526 = vmatprep.subr.bf16.mxu1 %v676_v59  ;;  %v686_v58 = vcombine.high %v67_v52, %v71_v53  ;;  %v688_v59 = vcombine.high %v68_v54, %v72_v55 }
  0x53   :  { %486 = vmatpush1.bf16.xpose.msra.mxu0 %v673_v0  ;;  %527 = vmatpush1.bf16.xpose.msra.mxu1 %v675_v1  ;;  %v685_v0 = vcombine.low %v67_v52, %v71_v53  ;;  %v687_v1 = vcombine.low %v68_v54, %v72_v55 }
  0x54   :  { %487 = vmatprep.subr.bf16.mxu0 %v666_v2  ;;  %528 = vmatprep.subr.bf16.mxu1 %v668_v3  ;;  %v678_v2 = vcombine.high %v59_v60, %v63_v61  ;;  %v680_v3 = vcombine.high %v60_v62, %v64_v63 }
  0x5b   :  { %488 = vmatpush1.bf16.xpose.msra.mxu0 %v665_v8  ;;  %529 = vmatpush1.bf16.xpose.msra.mxu1 %v667_v9  ;;  %v677_v8 = vcombine.low %v59_v60, %v63_v61  ;;  %v679_v9 = vcombine.low %v60_v62, %v64_v63 }
  0x5c   :  { %555 = vmatprep.subr.bf16.mxu0 %v726_v10  ;;  %596 = vmatprep.subr.bf16.mxu1 %v728_v11  ;;  %v670_v10 = vcombine.high %v51_v4, %v55_v5  ;;  %v672_v11 = vcombine.high %v52_v6, %v56_v7 }
  0x62   :  { %506 = vmatmul.mubr.bf16.vlgmr.msra.gmra.mxu0 %v657_v15  ;;  %547 = vmatmul.mubr.bf16.vlgmr.msra.gmra.mxu1 %v659_v19  ;;  %v663_v15 = vcombine.low %v850_v21, %v852_v26 }
  0x63   :  { %556 = vmatpush1.bf16.xpose.msra.mxu0 %v725_v20  ;;  %597 = vmatpush1.bf16.xpose.msra.mxu1 %v727_v27 }
  0x64   :  { %557 = vmatprep.subr.bf16.mxu0 %v718_v28  ;;  %598 = vmatprep.subr.bf16.mxu1 %v720_v29 }
  0x65   :  { %587 = vmatprep.mubr.bf16.mxu0 %v662_v30  ;;  %628 = vmatprep.mubr.bf16.mxu1 %v664_v22 }
  0x6b   :  { %558 = vmatpush1.bf16.xpose.msra.mxu0 %v717_v32  ;;  %599 = vmatpush1.bf16.xpose.msra.mxu1 %v719_v33 }
  0x6c   :  { %559 = vmatprep.subr.bf16.mxu0 %v710_v34  ;;  %600 = vmatprep.subr.bf16.mxu1 %v712_v35 }
  0x73   :  { %560 = vmatpush1.bf16.xpose.msra.mxu0 %v709_v40  ;;  %601 = vmatpush1.bf16.xpose.msra.mxu1 %v711_v41 }
  0x74   :  { %561 = vmatprep.subr.bf16.mxu0 %v702_v42  ;;  %602 = vmatprep.subr.bf16.mxu1 %v704_v43 }
  0x7b   :  { %562 = vmatpush1.bf16.xpose.msra.mxu0 %v701_v48  ;;  %603 = vmatpush1.bf16.xpose.msra.mxu1 %v703_v49 }
  0x7c   :  { %563 = vmatprep.subr.bf16.mxu0 %v694_v50  ;;  %604 = vmatprep.subr.bf16.mxu1 %v696_v51 }
  0x83   :  { %564 = vmatpush1.bf16.xpose.msra.mxu0 %v693_v56  ;;  %605 = vmatpush1.bf16.xpose.msra.mxu1 %v695_v57 }
  0x84   :  { %565 = vmatprep.subr.bf16.mxu0 %v686_v58  ;;  %606 = vmatprep.subr.bf16.mxu1 %v688_v59 }
  0x8b   :  { %566 = vmatpush1.bf16.xpose.msra.mxu0 %v685_v0  ;;  %607 = vmatpush1.bf16.xpose.msra.mxu1 %v687_v1 }
  0x8c   :  { %567 = vmatprep.subr.bf16.mxu0 %v678_v2  ;;  %608 = vmatprep.subr.bf16.mxu1 %v680_v3 }
  0x93   :  { %568 = vmatpush1.bf16.xpose.msra.mxu0 %v677_v8  ;;  %609 = vmatpush1.bf16.xpose.msra.mxu1 %v679_v9 }
  0x94   :  { %569 = vmatprep.subr.bf16.mxu0 %v670_v10  ;;  %610 = vmatprep.subr.bf16.mxu1 %v672_v11 }
  0x9b   :  { %570 = vmatpush1.bf16.xpose.msra.mxu0 %v669_v12  ;;  %611 = vmatpush1.bf16.xpose.msra.mxu1 %v671_v13 }
  0xa2   :  { %588 = vmatmul.mubr.bf16.vlgmr.msra.gmra.mxu0 %v661_v14  ;;  %629 = vmatmul.mubr.bf16.vlgmr.msra.gmra.mxu1 %v663_v15 }
 0x122   :  { %v507_v16 = vpop.f32.mrf.mxu0  ;;  %v548_v19 = vpop.f32.mrf.mxu1 }
 0x123   :  { %v549_v23 = vadd.f32 %v548_v19, %v507_v16 }
 0x124   :  { %v509_v20 = vpop.f32.mrf.mxu0  ;;  %v550_v27 = vpop.f32.mrf.mxu1 }
 0x126   :  { %v510_v28 = vpop.f32.mrf.mxu0  ;;  %v551_v29 = vpop.f32.mrf.mxu1 }
 0x127   :  { %v552_v33 = vadd.f32 %v551_v29, %v510_v28 }
 0x128   :  { %v512_v30 = vpop.f32.mrf.mxu0  ;;  %v553_v22 = vpop.f32.mrf.mxu1 }
 0x162   :  { %v589_v24 = vpop.f32.mrf.mxu0  ;;  %v630_v31 = vpop.f32.mrf.mxu1 }
 0x163   :  { %v590_v25 = vadd.f32 %v589_v24, %v549_v23 }
 0x164   :  { %v591_v32 = vpop.f32.mrf.mxu0  ;;  %v632_v18 = vpop.f32.mrf.mxu1 }
 0x165   :  { %v631_v17 = vadd.f32 %v630_v31, %v590_v25 }
 0x166   :  { %v592_v34 = vpop.f32.mrf.mxu0  ;;  %v633_v26 = vpop.f32.mrf.mxu1 }
 0x167   :  { %637 = vst [vmem:[#allocation7] sm:$0xff] %v631_v17  ;;  %v593_v21 = vadd.f32 %v592_v34, %v552_v33 }
 0x168   :  { %v594_v35 = vpop.f32.mrf.mxu0  ;;  %v635_v37 = vpop.f32.mrf.mxu1 }
 0x169   :  { %v634_v36 = vadd.f32 %v633_v26, %v593_v21 }
 0x16b   :  { %638 = vst [vmem:[#allocation7 + $0x8] sm:$0xff] %v634_v36 }
 0x16c   :  { %643 = vsyncadd [#allocation4], 128  ;;  %s806_s0 = smov [#allocation7]  }
 0x16d   :  { %s644_s1 = sshll.u32 %s806_s0, 4  ;;  %s645_s1 = int_to_ptr.vmem [resolvable:$true] %s644_s1 }
 0x16e   :  { %s776_s22 = scalar_lea.vmem %s645_s1, 128  ;;  %s780_s23 = scalar_lea.vmem %s645_s1, 256 }
 0x16f   :  { %p777_p10 = scmp.ne.s32.totalorder %s645_s1, %s776_s22  ;;  %p781_p11 = scmp.lt.s32.totalorder %s645_s1, %s645_s1 }
 0x170   :  { %p782_p12 = scmp.lt.s32.totalorder %s780_s23, %s776_s22 }
 0x172   :  { %p783_p13 = por %p782_p12, %p781_p11 }
 0x174   :  { %p784_p0 = pnand %p783_p13, %p777_p10 }
 0x176   :  { %787 = shalt.err (!%p784_p0)
}
 0x177   :  { %s807_s24 = smov 128   ;;  %s808_s25 = smov 8  }
 0x178   :  { %650 = dma.vmem_to_hbm [thread:$0]  %s645_s1, 128, %s867_s2, [#allocation4], %s807_s24, %s807_s24, %s808_s25  }
 0x179   :  { %800 = dma.done.wait [#allocation4], 256  }
 0x17a   :  { %801 = vsyncadd [#allocation4], 4294967040 }
 0x17b   :  { %654 = vsyncpa [#allocation3], 1 }
 0x17c   :  { %655 = vsyncpa [#allocation6], 1 }
 0x17d   :  { %656 = vsyncpa [#allocation4], 1 }

</bundles_post_ra>
